<compile_context>
chip_gen: v6e
topology: v6e:2x2x1
jax: 0.10.0
libtpu: 0.0.40
codegen_flags: <defaults>
</compile_context>

<pallas_src>
import functools

import jax
import jax.numpy as jnp
from jax.experimental import pallas as pl
from jax.experimental.pallas import tpu as pltpu


def _simple_head_kernel(x_ref, w1_ref, b1_ref, w2_ref, b2_ref, o_ref, *, compute_dtype):
    # Cast the x tile in-kernel so the HBM->VMEM DMA moves x at its native dtype exactly once.
    x = x_ref[...].astype(compute_dtype)
    # Layer 1: Linear(in_dim, hidden) on the MXU, f32 accumulation.
    h = jnp.dot(x, w1_ref[...], preferred_element_type=jnp.float32)
    # Bias + ReLU in f32 on the VPU.
    h = jnp.maximum(h + b1_ref[...], 0.0)
    # Dropout(0.5): inference-mode forward is identity (inverted dropout, no eval scaling).
    # TODO(synk): training-mode dropout (pltpu.prng_seed + pltpu.prng_random_bits mask) not implemented.
    # Layer 2: Linear(hidden, num_classes) on the MXU; activation cast to the weight dtype.
    y = jnp.dot(h.astype(compute_dtype), w2_ref[...], preferred_element_type=jnp.float32)
    o_ref[...] = (y + b2_ref[...]).astype(o_ref.dtype)


def _round_up(n, m):
    return ((n + m - 1) // m) * m


def prepare_params(w1, b1, w2, b2, *, use_bf16=True):
    """One-time parameter prep (hoisted out of the per-call forward path).

    Casts weights to bf16 (MXU-native, half the DMA bytes) and biases to f32 (they are
    added to the f32 accumulator). Weights are stored pre-transposed [in, out].
    Set use_bf16=False to keep full f32 numerics (matches the PyTorch module exactly).
    """
    wdt = jnp.bfloat16 if use_bf16 else jnp.float32
    return (w1.astype(wdt),
            b1.astype(jnp.float32).reshape(1, -1),
            w2.astype(wdt),
            b2.astype(jnp.float32).reshape(1, -1))


def simple_head_forward(x, w1, b1, w2, b2, *, block_batch=1024):
    """Fused MLP head. Expects params already processed by prepare_params().

    x: [B, in_dim] (native dtype, cast in-kernel); w1: [in_dim, hidden] (bf16);
    b1: [1, hidden] (f32); w2: [hidden, num_classes] (bf16); b2: [1, num_classes] (f32).
    Returns [B, num_classes] in x.dtype.
    """
    B, in_dim = x.shape
    hidden = w1.shape[1]
    num_classes = w2.shape[1]
    out_dtype = x.dtype

    # ---- Batch tile: multiple of 8, as large as block_batch allows, but keep >=2 grid
    #      steps when possible so the "parallel" axis feeds both v7x TensorCores.
    b8 = _round_up(B, 8)
    tb = min(_round_up(block_batch, 8), b8)
    if b8 >= 16 and tb > b8 // 2:
        tb = _round_up(max(b8 // 2, 8), 8)

    grid = (pl.cdiv(B, tb),)

    bytes_accessed = (x.size * x.dtype.itemsize
                      + w1.size * w1.dtype.itemsize
                      + b1.size * b1.dtype.itemsize
                      + w2.size * w2.dtype.itemsize
                      + b2.size * b2.dtype.itemsize
                      + B * num_classes * jnp.dtype(out_dtype).itemsize)
    cost = pl.CostEstimate(
        flops=2 * B * (in_dim * hidden + hidden * num_classes),
        transcendentals=0,
        bytes_accessed=bytes_accessed,
    )

    kernel = functools.partial(_simple_head_kernel, compute_dtype=w1.dtype)

    out = pl.pallas_call(
        kernel,
        out_shape=jax.ShapeDtypeStruct((B, num_classes), out_dtype),
        grid=grid,
        in_specs=[
            pl.BlockSpec((tb, in_dim), lambda i: (i, 0)),          # x: pipelined batch tiles
            pl.BlockSpec((in_dim, hidden), lambda i: (0, 0)),      # w1: VMEM-resident
            pl.BlockSpec((1, hidden), lambda i: (0, 0)),           # b1: VMEM-resident
            pl.BlockSpec((hidden, num_classes), lambda i: (0, 0)),  # w2: VMEM-resident
            pl.BlockSpec((1, num_classes), lambda i: (0, 0)),      # b2: VMEM-resident
        ],
        out_specs=pl.BlockSpec((tb, num_classes), lambda i: (i, 0)),
        compiler_params=pltpu.CompilerParams(
            dimension_semantics=("parallel",),  # shard batch tiles across v7x's 2 TCs
        ),
        cost_estimate=cost,
    )(x, w1, b1, w2, b2)

    return out


def init_params(key, in_dim, hidden=256, num_classes=2, dtype=jnp.float32):
    """Deterministic synthetic parameters (PyTorch-Linear-style uniform init),
    stored pre-transposed as [in, out]."""
    k1, k2, k3, k4 = jax.random.split(key, 4)
    bound1 = 1.0 / (in_dim ** 0.5)
    bound2 = 1.0 / (hidden ** 0.5)
    w1 = jax.random.uniform(k1, (in_dim, hidden), dtype, -bound1, bound1)
    b1 = jax.random.uniform(k2, (1, hidden), dtype, -bound1, bound1)
    w2 = jax.random.uniform(k3, (hidden, num_classes), dtype, -bound2, bound2)
    b2 = jax.random.uniform(k4, (1, num_classes), dtype, -bound2, bound2)
    return w1, b1, w2, b2


if __name__ == "__main__":
    key = jax.random.PRNGKey(0)
    kx, kp = jax.random.split(key)

    batch, in_dim, hidden, num_classes = 8, 32, 256, 2
    x = jax.random.normal(kx, (batch, in_dim), jnp.float32)
    w1, b1, w2, b2 = init_params(kp, in_dim, hidden, num_classes)

    # One-time parameter prep (bf16 weights, f32 biases) — outside the per-call path.
    pw1, pb1, pw2, pb2 = prepare_params(w1, b1, w2, b2, use_bf16=True)

    out = simple_head_forward(x, pw1, pb1, pw2, pb2)
    out = jax.block_until_ready(out)

    # Pure-JAX reference mirroring the in-kernel bf16 MXU operand casts
    # (eval-mode dropout == identity).
    h_ref = jnp.maximum(
        jnp.dot(x.astype(jnp.bfloat16), pw1, preferred_element_type=jnp.float32) + pb1,
        0.0)
    ref = jnp.dot(h_ref.astype(jnp.bfloat16), pw2,
                  preferred_element_type=jnp.float32) + pb2

    assert out.shape == (batch, num_classes)
    assert jnp.allclose(out, ref, atol=1e-3, rtol=1e-3), (
        f"max abs err {jnp.max(jnp.abs(out - ref))}")
    print("KERNEL_OK")
</pallas_src>

<mosaic_0001>
module attributes {stable_mosaic.version = 11 : i64} {
  func.func @_simple_head_kernel(%arg0: i32, %arg1: memref<8x32xf32, #tpu.memory_space<vmem>>, %arg2: memref<32x256xbf16, #tpu.memory_space<vmem>>, %arg3: memref<1x256xf32, #tpu.memory_space<vmem>>, %arg4: memref<256x2xbf16, #tpu.memory_space<vmem>>, %arg5: memref<1x2xf32, #tpu.memory_space<vmem>>, %arg6: memref<8x2xf32, #tpu.memory_space<vmem>>) attributes {dimension_semantics = [#tpu.dimension_semantics<parallel>], iteration_bounds = array<i64: 1>, scalar_prefetch = 0 : i64, scratch_operands = 0 : i64, tpu.core_type = #tpu.core_type<tc>, window_params = [{transform_indices = @transform_0, window_bounds = array<i64: 8, 32>}, {pipeline_mode = #tpu.pipeline_mode<synchronous>, transform_indices = @transform_1, window_bounds = array<i64: 32, 256>}, {pipeline_mode = #tpu.pipeline_mode<synchronous>, transform_indices = @transform_2, window_bounds = array<i64: 1, 256>}, {pipeline_mode = #tpu.pipeline_mode<synchronous>, transform_indices = @transform_3, window_bounds = array<i64: 256, 2>}, {pipeline_mode = #tpu.pipeline_mode<synchronous>, transform_indices = @transform_4, window_bounds = array<i64: 1, 2>}, {transform_indices = @transform_5, window_bounds = array<i64: 8, 2>}]} {
    %c0 = arith.constant 0 : index
    %c0_0 = arith.constant 0 : index
    %0 = vector.load %arg1[%c0, %c0_0] : memref<8x32xf32, #tpu.memory_space<vmem>>, vector<8x32xf32>
    %1 = arith.truncf %0 : vector<8x32xf32> to vector<8x32xbf16>
    %c0_1 = arith.constant 0 : index
    %c0_2 = arith.constant 0 : index
    %2 = vector.load %arg2[%c0_1, %c0_2] : memref<32x256xbf16, #tpu.memory_space<vmem>>, vector<32x256xbf16>
    %cst = arith.constant dense<0.000000e+00> : vector<8x256xf32>
    %3 = tpu.matmul %1, %2, %cst {dimension_numbers = #tpu.dot_dimension_numbers<[1], [0], [0], [1], [0, 0, 1, 1], [], []>} : vector<8x32xbf16>, vector<32x256xbf16>, vector<8x256xf32> -> vector<8x256xf32>
    %c0_3 = arith.constant 0 : index
    %c0_4 = arith.constant 0 : index
    %4 = vector.load %arg3[%c0_3, %c0_4] : memref<1x256xf32, #tpu.memory_space<vmem>>, vector<1x256xf32>
    %5 = vector.broadcast %4 : vector<1x256xf32> to vector<8x256xf32>
    %6 = arith.addf %3, %5 : vector<8x256xf32>
    %cst_5 = arith.constant 0.000000e+00 : f32
    %7 = vector.broadcast %cst_5 : f32 to vector<8x256xf32>
    %8 = arith.maximumf %6, %7 : vector<8x256xf32>
    %9 = arith.truncf %8 : vector<8x256xf32> to vector<8x256xbf16>
    %c0_6 = arith.constant 0 : index
    %c0_7 = arith.constant 0 : index
    %10 = vector.load %arg4[%c0_6, %c0_7] : memref<256x2xbf16, #tpu.memory_space<vmem>>, vector<256x2xbf16>
    %cst_8 = arith.constant dense<0.000000e+00> : vector<8x2xf32>
    %11 = tpu.matmul %9, %10, %cst_8 {dimension_numbers = #tpu.dot_dimension_numbers<[1], [0], [0], [1], [0, 0, 1, 1], [], []>} : vector<8x256xbf16>, vector<256x2xbf16>, vector<8x2xf32> -> vector<8x2xf32>
    %c0_9 = arith.constant 0 : index
    %c0_10 = arith.constant 0 : index
    %12 = vector.load %arg5[%c0_9, %c0_10] : memref<1x2xf32, #tpu.memory_space<vmem>>, vector<1x2xf32>
    %13 = vector.broadcast %12 : vector<1x2xf32> to vector<8x2xf32>
    %14 = arith.addf %11, %13 : vector<8x2xf32>
    %c0_11 = arith.constant 0 : index
    %c0_12 = arith.constant 0 : index
    %15 = vector.load %arg6[%c0_11, %c0_12] : memref<8x2xf32, #tpu.memory_space<vmem>>, vector<8x2xf32>
    tpu.vector_store %arg6[%c0_11, %c0_12], %14 {strides = array<i32>} : memref<8x2xf32, #tpu.memory_space<vmem>>, vector<8x2xf32>,
    return
  }
  func.func @transform_0(%arg0: i32) -> (i32, i32) {
    %c0_i32 = arith.constant 0 : i32
    %c0_i32_0 = arith.constant 0 : i32
    return %arg0, %c0_i32 : i32, i32
  }
  func.func @transform_1(%arg0: i32) -> (i32, i32) {
    %c0_i32 = arith.constant 0 : i32
    %c0_i32_0 = arith.constant 0 : i32
    %c0_i32_1 = arith.constant 0 : i32
    return %c0_i32, %c0_i32_0 : i32, i32
  }
  func.func @transform_2(%arg0: i32) -> (i32, i32) {
    %c0_i32 = arith.constant 0 : i32
    %c0_i32_0 = arith.constant 0 : i32
    %c0_i32_1 = arith.constant 0 : i32
    return %c0_i32, %c0_i32_0 : i32, i32
  }
  func.func @transform_3(%arg0: i32) -> (i32, i32) {
    %c0_i32 = arith.constant 0 : i32
    %c0_i32_0 = arith.constant 0 : i32
    %c0_i32_1 = arith.constant 0 : i32
    return %c0_i32, %c0_i32_0 : i32, i32
  }
  func.func @transform_4(%arg0: i32) -> (i32, i32) {
    %c0_i32 = arith.constant 0 : i32
    %c0_i32_0 = arith.constant 0 : i32
    %c0_i32_1 = arith.constant 0 : i32
    return %c0_i32, %c0_i32_0 : i32, i32
  }
  func.func @transform_5(%arg0: i32) -> (i32, i32) {
    %c0_i32 = arith.constant 0 : i32
    %c0_i32_0 = arith.constant 0 : i32
    return %arg0, %c0_i32 : i32, i32
  }
}

</mosaic_0001>

<bundles_post_ra>
// kernel: tpu_custom_call.1
= control target key start
LH: loop header
LB: loop body
LE: loop exit
PB: predicated region body
PF: predicated region fallthrough
CT: control target
= control target key end

     0   :  { %v356_v1 = vmov 0   ;;  %vm59_vm0 = vcmask 261120   ;;  %v29_v23 = vlaneseq  ;;  %vm283_vm1 = vcmask 15360   ;;  %s459_s1 = inlined_call_operand.vmem [shape: bf16[32,256], index: 1, kind: input, shape index: {}]   ;;  %s460_s0 = inlined_call_operand.vmem [shape: f32[8,32], index: 0, kind: input, shape index: {}]   ;;  %s461_s3 = inlined_call_operand.vmem [shape: bf16[256,2], index: 3, kind: input, shape index: {}]   ;;  %s462_s2 = inlined_call_operand.vmem [shape: f32[1,256], index: 2, kind: input, shape index: {}]   ;;  %s463_s4 = inlined_call_operand.vmem [shape: f32[1,2], index: 4, kind: input, shape index: {}]   ;;  %s464_s5 = inlined_call_operand.vmem [shape: f32[8,2], index: 5, kind: output, shape index: {}]  }
   0x1   :  { %v334_v0 = vld [vmem:[%s459_s1 + $0x14] ss:$8 sps:$4 sm:$0xff]   ;;  %95 = vmatprep.mubr.bf16.mxu0 %v356_v1  ;;  %v336_v2 = vld [vmem:[%s459_s1 + $0x10] ss:$8 sps:$4 sm:$0xff]   ;;  %v337_v3 = vld [vmem:[%s459_s1 + $0x4] ss:$8 sps:$4 sm:$0xff]  }
   0x2   :  { %75 = vmatprep.subr.bf16.mxu0 %v334_v0  ;;  %v339_v4 = vld [vmem:[%s459_s1] ss:$8 sps:$4 sm:$0xff]   ;;  %v340_v6 = vld [vmem:[%s461_s3 + $0x78] sm:$0xff]   ;;  %v342_v8 = vld [vmem:[%s461_s3 + $0x70] sm:$0xff]   ;;  %v30_v24 = vshrl.u32 %v29_v23, 7 }
   0x3   :  { %v21_v5 = vld [vmem:[%s460_s0] sm:$0xff]  ;;  %76 = vmatpush1.bf16.msra.mxu0 %v336_v2  ;;  %v341_v7 = vld [vmem:[%s461_s3 + $0x38] sm:$0xff]   ;;  %311 = vmatprep.subr.bf16.mxu1 %v340_v6  ;;  %v343_v10 = vld [vmem:[%s461_s3 + $0x30] sm:$0xff]  }
   0x4   :  { %77 = vmatprep.subr.bf16.mxu0 %v337_v3  ;;  %v22_v9 = vpack.c.bf16 %v21_v5, %v21_v5  ;;  %312 = vmatpush3.bf16.msra.mxu1 %v341_v7  ;;  %v344_v11 = vld [vmem:[%s461_s3 + $0x68] sm:$0xff]   ;;  %v346_v13 = vld [vmem:[%s461_s3 + $0x60] sm:$0xff]   ;;  %v348_v15 = vld [vmem:[%s461_s3 + $0x58] sm:$0xff]   ;;  %v31_v25 = vsub.s32 0, %v30_v24  ;;  %v35_v27 = vsub.s32 1, %v30_v24 }
   0x5   :  { %313 = vmatprep.subr.bf16.mxu1 %v342_v8  ;;  %v345_v12 = vld [vmem:[%s461_s3 + $0x28] sm:$0xff]   ;;  %v347_v14 = vld [vmem:[%s461_s3 + $0x20] sm:$0xff]   ;;  %v349_v16 = vld [vmem:[%s461_s3 + $0x18] sm:$0xff]  }
   0x6   :  { %v350_v17 = vld [vmem:[%s461_s3 + $0x50] sm:$0xff]   ;;  %v352_v19 = vld [vmem:[%s461_s3 + $0x48] sm:$0xff]   ;;  %v354_v21 = vld [vmem:[%s461_s3 + $0x40] sm:$0xff]  }
   0x7   :  { %78 = vmatpush1.bf16.msra.mxu0 %v339_v4  ;;  %v351_v18 = vld [vmem:[%s461_s3 + $0x10] sm:$0xff]   ;;  %v353_v20 = vld [vmem:[%s461_s3 + $0x8] sm:$0xff]   ;;  %v355_v22 = vld [vmem:[%s461_s3] sm:$0xff]  }
   0x8   :  { %314 = vmatpush3.bf16.msra.mxu1 %v343_v10  ;;  %v27_v26 = vld [vmem:[%s462_s2] sm:$0x3] }
   0x9   :  { %315 = vmatprep.subr.bf16.mxu1 %v344_v11  ;;  %v32_v28 = vrot.slane %v27_v26, %v31_v25  ;;  %v36_v29 = vrot.slane %v27_v26, %v35_v27  ;;  %v294_v41 = vld [vmem:[%s463_s4] ss:$0 sm:$0xff] }
   0xa   :  { %293 = vmatmul.mubr.msk.bf16.vlgmr.msra.gmra.mxu0 %vm59_vm0, %v22_v9 }
   0xc   :  { %316 = vmatpush3.bf16.msra.mxu1 %v345_v12 }
   0xd   :  { %317 = vmatprep.subr.bf16.mxu1 %v346_v13 }
  0x10   :  { %318 = vmatpush3.bf16.msra.mxu1 %v347_v14 }
  0x11   :  { %319 = vmatprep.subr.bf16.mxu1 %v348_v15 }
  0x14   :  { %320 = vmatpush3.bf16.msra.mxu1 %v349_v16 }
  0x15   :  { %321 = vmatprep.subr.bf16.mxu1 %v350_v17 }
  0x18   :  { %322 = vmatpush3.bf16.msra.mxu1 %v351_v18 }
  0x19   :  { %323 = vmatprep.subr.bf16.mxu1 %v352_v19 }
  0x1c   :  { %324 = vmatpush3.bf16.msra.mxu1 %v353_v20 }
  0x1d   :  { %325 = vmatprep.subr.bf16.mxu1 %v354_v21 }
  0x20   :  { %326 = vmatpush3.bf16.msra.mxu1 %v355_v22 }
  0xca   :  { %v97_v30 = vpop.f32.mrf.mxu0 }
  0xcb   :  { %v98_v31 = vadd.f32 %v97_v30, %v32_v28 }
  0xcc   :  { %v99_v32 = vpop.f32.mrf.mxu0 }
  0xcd   :  { %v100_v33 = vadd.f32 %v99_v32, %v36_v29  ;;  %v104_v34 = vmax.f32 %v98_v31, 0.0 }
  0xce   :  { %v101_v35 = vpop.f32.mrf.mxu0 }
  0xcf   :  { %v105_v36 = vmax.f32 %v100_v33, 0.0  ;;  %v106_v39 = vpack.c.bf16 %v104_v34, %v104_v34 }
  0xd0   :  { %v102_v37 = vpop.f32.mrf.mxu0 }
  0xd1   :  { %v107_v38 = vpack.c.bf16 %v105_v36, %v105_v36 }
  0xd3   :  { %275 = vmatprep.mubr.bf16.mxu1 %v107_v38 }
  0xd4   :  { %276 = vmatmul.mubr.bf16.vlgmr.msra.gmra.mxu1 %v106_v39 }
 0x194   :  { %v327_v40 = vpop.f32.mrf.mxu1 }
 0x196   :  { %v328_v42 = vpop.f32.mrf.mxu1 }
 0x197   :  { %v329_v43 = vadd.f32 %v328_v42, %v327_v40 }
 0x198   :  { %v330_v44 = vpop.f32.mrf.mxu1 }
 0x199   :  { %v278_v45 = vadd.f32 %v329_v43, %v294_v41 }
 0x19a   :  { %v331_v46 = vpop.f32.mrf.mxu1 }
 0x19b   :  { %284 = vst.msk [vmem:[%s464_s5] sm:$0xff] %vm283_vm1, %v278_v45 }

</bundles_post_ra>
